<compile_context>
chip_gen: v6e
topology: v6e:2x2x1
jax: 0.10.0
libtpu: 0.0.40
codegen_flags: <defaults>
</compile_context>

<pallas_src>
import numpy as np
import jax
import jax.numpy as jnp
from jax.experimental import pallas as pl
from jax.experimental.pallas import tpu as pltpu

MID_DIM = 32
LN_EPS = 1e-5


def _layernorm(h, gamma, beta):
    mu = jnp.mean(h, axis=-1, keepdims=True)
    var = jnp.mean((h - mu) ** 2, axis=-1, keepdims=True)
    return (h - mu) * jax.lax.rsqrt(var + LN_EPS) * gamma + beta


# ---------------------------------------------------------------------------
# Fused kernel: radial MLP + frequency contraction for one block of bn edges.
#
#   ye  = h2 @ w3e + b3e      columns ordered (f, co, do, ci, di)   -- MXU
#   be  = basis @ sel         same column order (0/1 selection)     -- MXU
#   out = sum_f ye_f * be_f   written in final (co, do, ci, di) order
# ---------------------------------------------------------------------------
def _fused_pairwise_conv_kernel(x_ref, basis_ref,
                                w1_ref, b1_ref, g1_ref, be1_ref,
                                w2_ref, b2_ref, g2_ref, be2_ref,
                                w3e_ref, b3e_ref, sel_ref,
                                o_ref):
    f32 = jnp.float32
    x = x_ref[...]                                            # (bn, 1)
    # Linear(1, 32): contraction dim is 1 -> broadcast multiply, no MXU needed.
    h = x * w1_ref[...] + b1_ref[...]                         # (bn, 32)
    h = jnp.maximum(_layernorm(h, g1_ref[...], be1_ref[...]), 0.0)
    h = jnp.dot(h.astype(w2_ref.dtype), w2_ref[...],
                preferred_element_type=f32) + b2_ref[...]     # (bn, 32)
    h = jnp.maximum(_layernorm(h, g2_ref[...], be2_ref[...]), 0.0)

    # Expanded final linear: (bn, 32) @ (32, F*OUT_W), f32 accumulation.
    ye = jnp.dot(h.astype(w3e_ref.dtype), w3e_ref[...],
                 preferred_element_type=f32) + b3e_ref[...]   # (bn, F*OUT_W)
    # Basis expansion (do,di,f) -> (f,co,do,ci,di) via constant 0/1 matrix.
    be = jnp.dot(basis_ref[...].astype(sel_ref.dtype), sel_ref[...],
                 preferred_element_type=f32)                  # (bn, F*OUT_W)

    out_w = o_ref.shape[-1]
    nf = ye.shape[-1] // out_w
    acc = ye[:, :out_w] * be[:, :out_w]
    for f in range(1, nf):                                    # static unroll (num_freq small)
        lo = f * out_w
        acc = acc + ye[:, lo:lo + out_w] * be[:, lo:lo + out_w]
    o_ref[...] = acc                                          # lane-dense (bn, OUT_W) store


def pairwise_conv_forward(feat, basis6, params, *, degree_in, nc_in, degree_out,
                          nc_out, input_feature_size, block_n=1024, use_bf16=True):
    num_freq = 2 * min(degree_in, degree_out) + 1
    d_in = 2 * degree_in + 1
    d_out = 2 * degree_out + 1
    N = feat.shape[0]
    DD = d_out * d_in
    BW = DD * num_freq                               # basis row width, flat (do, di, f)
    OUT_W = nc_out * d_out * nc_in * d_in            # final flat width (co, do, ci, di)

    # ---- host-side constant index plumbing (tiny, independent of N) ----
    f_ = np.arange(num_freq).reshape(num_freq, 1, 1, 1, 1)
    co = np.arange(nc_out).reshape(1, nc_out, 1, 1, 1)
    do = np.arange(d_out).reshape(1, 1, d_out, 1, 1)
    ci = np.arange(nc_in).reshape(1, 1, 1, nc_in, 1)
    di = np.arange(d_in).reshape(1, 1, 1, 1, d_in)
    full = (num_freq, nc_out, d_out, nc_in, d_in)
    # expanded column j corresponds to (f, co, do, ci, di):
    w3_src = np.broadcast_to((co * nc_in + ci) * num_freq + f_, full).reshape(-1)
    b_src = np.broadcast_to((do * d_in + di) * num_freq + f_, full).reshape(-1)
    sel_np = (np.arange(BW)[:, None] == b_src[None, :]).astype(np.float32)  # (BW, F*OUT_W)

    w3e = jnp.take(params["w3"], jnp.asarray(w3_src), axis=1)   # (MID, F*OUT_W)
    b3e = jnp.take(params["b3"], jnp.asarray(w3_src), axis=1)   # (1,   F*OUT_W)

    mm_dtype = jnp.bfloat16 if use_bf16 else jnp.float32
    w2 = params["w2"].astype(mm_dtype)
    w3e = w3e.astype(mm_dtype)
    sel = jnp.asarray(sel_np, dtype=mm_dtype)

    # Contiguous reshape only — no transpose pass over the basis tensor.
    basis2d = basis6.reshape(N, BW)

    # Edge-tile size: full array if small, otherwise block_n rounded to 8
    # (default 1024: multiple of 128 for v5e's MXU, ~10-12 MiB VMEM incl. transients).
    bn = N if N <= block_n else max(8, (block_n // 8) * 8)
    grid = (pl.cdiv(N, bn),)      # ragged tail handled by Pallas block clipping

    const_args = (params["w1"], params["b1"], params["g1"], params["be1"],
                  w2, params["b2"], params["g2"], params["be2"],
                  w3e, b3e, sel)

    out2d = pl.pallas_call(
        _fused_pairwise_conv_kernel,
        out_shape=jax.ShapeDtypeStruct((N, OUT_W), jnp.float32),
        grid=grid,
        in_specs=[pl.BlockSpec((bn, 1), lambda i: (i, 0)),          # feat   : streamed
                  pl.BlockSpec((bn, BW), lambda i: (i, 0))]         # basis  : streamed
                 + [pl.BlockSpec(a.shape, lambda i: (0, 0))         # weights: VMEM-resident
                    for a in const_args],
        out_specs=pl.BlockSpec((bn, OUT_W), lambda i: (i, 0)),
        compiler_params=pltpu.CompilerParams(
            dimension_semantics=("parallel",),                      # v7x: 2 TCs share edge blocks
            vmem_limit_bytes=32 * 1024 * 1024),
    )(feat, basis2d, *const_args)

    # Already in (co, do, ci, di) order -> torch's .view is a free reshape.
    return out2d.reshape(N, input_feature_size, -1)


# ---------------------------------------------------------------------------
# Pure-JAX reference mirroring the PyTorch forward exactly (f32)
# ---------------------------------------------------------------------------
def reference_forward(feat, basis6, params, *, degree_in, nc_in, degree_out,
                      nc_out, input_feature_size):
    num_freq = 2 * min(degree_in, degree_out) + 1
    h = feat @ params["w1"] + params["b1"]
    h = jnp.maximum(_layernorm(h, params["g1"], params["be1"]), 0.0)
    h = h @ params["w2"] + params["b2"]
    h = jnp.maximum(_layernorm(h, params["g2"], params["be2"]), 0.0)
    y = h @ params["w3"] + params["b3"]
    R = y.reshape(-1, nc_out, 1, nc_in, 1, num_freq)
    K = jnp.sum(R * basis6, axis=-1)
    return K.reshape(feat.shape[0], input_feature_size, -1)


if __name__ == "__main__":
    degree_in, degree_out = 1, 1
    nc_in, nc_out = 4, 4
    N = 8
    num_freq = 2 * min(degree_in, degree_out) + 1     # 3
    d_in, d_out = 2 * degree_in + 1, 2 * degree_out + 1
    input_feature_size = nc_out * d_out               # 12
    CCF = num_freq * nc_in * nc_out                   # 48

    f32 = jnp.float32
    keys = jax.random.split(jax.random.PRNGKey(0), 12)
    params = {
        "w1": 0.5 * jax.random.normal(keys[0], (1, MID_DIM), f32),
        "b1": 0.1 * jax.random.normal(keys[1], (1, MID_DIM), f32),
        "g1": 1.0 + 0.1 * jax.random.normal(keys[2], (1, MID_DIM), f32),
        "be1": 0.1 * jax.random.normal(keys[3], (1, MID_DIM), f32),
        "w2": jax.random.normal(keys[4], (MID_DIM, MID_DIM), f32) / jnp.sqrt(MID_DIM),
        "b2": 0.1 * jax.random.normal(keys[5], (1, MID_DIM), f32),
        "g2": 1.0 + 0.1 * jax.random.normal(keys[6], (1, MID_DIM), f32),
        "be2": 0.1 * jax.random.normal(keys[7], (1, MID_DIM), f32),
        "w3": jax.random.normal(keys[8], (MID_DIM, CCF), f32) / jnp.sqrt(MID_DIM),
        "b3": 0.1 * jax.random.normal(keys[9], (1, CCF), f32),
    }

    feat = jax.random.uniform(keys[10], (N, 1), f32, minval=0.1, maxval=2.0)
    basis = {f"{degree_in},{degree_out}": jax.random.normal(
        keys[11], (N, 1, d_out, 1, d_in, num_freq), f32)}
    bkey = f"{degree_in},{degree_out}"

    cfg = dict(degree_in=degree_in, nc_in=nc_in, degree_out=degree_out,
               nc_out=nc_out, input_feature_size=input_feature_size)

    ref = reference_forward(feat, basis[bkey], params, **cfg)

    # f32-MXU path: tight check of the fused indexing / layout plumbing.
    out_f32 = pairwise_conv_forward(feat, basis[bkey], params, use_bf16=False, **cfg)
    out_f32 = jax.block_until_ready(out_f32)
    assert out_f32.shape == (N, input_feature_size, nc_in * d_in), out_f32.shape
    assert bool(jnp.all(jnp.isfinite(out_f32)))
    assert bool(jnp.allclose(out_f32, ref, atol=1e-2, rtol=1e-2)), \
        float(jnp.max(jnp.abs(out_f32 - ref)))

    # Performance path: bf16 MXU inputs, f32 accumulation (looser tolerance for bf16).
    out = pairwise_conv_forward(feat, basis[bkey], params, use_bf16=True, **cfg)
    out = jax.block_until_ready(out)
    assert out.shape == (N, input_feature_size, nc_in * d_in), out.shape
    assert bool(jnp.all(jnp.isfinite(out)))
    assert bool(jnp.allclose(out, ref, atol=5e-2, rtol=5e-2)), \
        float(jnp.max(jnp.abs(out - ref)))

    print("KERNEL_OK")
</pallas_src>

<mosaic_0001>
module attributes {stable_mosaic.version = 11 : i64} {
  func.func @_fused_pairwise_conv_kernel(%arg0: i32, %arg1: memref<8x1xf32, #tpu.memory_space<vmem>>, %arg2: memref<8x27xf32, #tpu.memory_space<vmem>>, %arg3: memref<1x32xf32, #tpu.memory_space<vmem>>, %arg4: memref<1x32xf32, #tpu.memory_space<vmem>>, %arg5: memref<1x32xf32, #tpu.memory_space<vmem>>, %arg6: memref<1x32xf32, #tpu.memory_space<vmem>>, %arg7: memref<32x32xf32, #tpu.memory_space<vmem>>, %arg8: memref<1x32xf32, #tpu.memory_space<vmem>>, %arg9: memref<1x32xf32, #tpu.memory_space<vmem>>, %arg10: memref<1x32xf32, #tpu.memory_space<vmem>>, %arg11: memref<32x432xf32, #tpu.memory_space<vmem>>, %arg12: memref<1x432xf32, #tpu.memory_space<vmem>>, %arg13: memref<27x432xf32, #tpu.memory_space<vmem>>, %arg14: memref<8x144xf32, #tpu.memory_space<vmem>>) attributes {dimension_semantics = [#tpu.dimension_semantics<parallel>], iteration_bounds = array<i64: 1>, scalar_prefetch = 0 : i64, scratch_operands = 0 : i64, tpu.core_type = #tpu.core_type<tc>, window_params = [{transform_indices = @transform_0, window_bounds = array<i64: 8, 1>}, {transform_indices = @transform_1, window_bounds = array<i64: 8, 27>}, {pipeline_mode = #tpu.pipeline_mode<synchronous>, transform_indices = @transform_2, window_bounds = array<i64: 1, 32>}, {pipeline_mode = #tpu.pipeline_mode<synchronous>, transform_indices = @transform_3, window_bounds = array<i64: 1, 32>}, {pipeline_mode = #tpu.pipeline_mode<synchronous>, transform_indices = @transform_4, window_bounds = array<i64: 1, 32>}, {pipeline_mode = #tpu.pipeline_mode<synchronous>, transform_indices = @transform_5, window_bounds = array<i64: 1, 32>}, {pipeline_mode = #tpu.pipeline_mode<synchronous>, transform_indices = @transform_6, window_bounds = array<i64: 32, 32>}, {pipeline_mode = #tpu.pipeline_mode<synchronous>, transform_indices = @transform_7, window_bounds = array<i64: 1, 32>}, {pipeline_mode = #tpu.pipeline_mode<synchronous>, transform_indices = @transform_8, window_bounds = array<i64: 1, 32>}, {pipeline_mode = #tpu.pipeline_mode<synchronous>, transform_indices = @transform_9, window_bounds = array<i64: 1, 32>}, {pipeline_mode = #tpu.pipeline_mode<synchronous>, transform_indices = @transform_10, window_bounds = array<i64: 32, 432>}, {pipeline_mode = #tpu.pipeline_mode<synchronous>, transform_indices = @transform_11, window_bounds = array<i64: 1, 432>}, {pipeline_mode = #tpu.pipeline_mode<synchronous>, transform_indices = @transform_12, window_bounds = array<i64: 27, 432>}, {transform_indices = @transform_13, window_bounds = array<i64: 8, 144>}]} {
    %c0 = arith.constant 0 : index
    %c0_0 = arith.constant 0 : index
    %0 = vector.load %arg1[%c0, %c0_0] : memref<8x1xf32, #tpu.memory_space<vmem>>, vector<8x1xf32>
    %c0_1 = arith.constant 0 : index
    %c0_2 = arith.constant 0 : index
    %1 = vector.load %arg3[%c0_1, %c0_2] : memref<1x32xf32, #tpu.memory_space<vmem>>, vector<1x32xf32>
    %2 = vector.broadcast %0 : vector<8x1xf32> to vector<8x32xf32>
    %3 = vector.broadcast %1 : vector<1x32xf32> to vector<8x32xf32>
    %4 = arith.mulf %2, %3 : vector<8x32xf32>
    %c0_3 = arith.constant 0 : index
    %c0_4 = arith.constant 0 : index
    %5 = vector.load %arg4[%c0_3, %c0_4] : memref<1x32xf32, #tpu.memory_space<vmem>>, vector<1x32xf32>
    %6 = vector.broadcast %5 : vector<1x32xf32> to vector<8x32xf32>
    %7 = arith.addf %4, %6 : vector<8x32xf32>
    %c0_5 = arith.constant 0 : index
    %c0_6 = arith.constant 0 : index
    %8 = vector.load %arg5[%c0_5, %c0_6] : memref<1x32xf32, #tpu.memory_space<vmem>>, vector<1x32xf32>
    %c0_7 = arith.constant 0 : index
    %c0_8 = arith.constant 0 : index
    %9 = vector.load %arg6[%c0_7, %c0_8] : memref<1x32xf32, #tpu.memory_space<vmem>>, vector<1x32xf32>
    %cst = arith.constant dense<0.000000e+00> : vector<8xf32>
    %10 = vector.multi_reduction <add>, %7, %cst [1] : vector<8x32xf32> to vector<8xf32>
    %11 = vector.shape_cast %10 : vector<8xf32> to vector<8x1xf32>
    %cst_9 = arith.constant 3.200000e+01 : f32
    %12 = vector.broadcast %cst_9 : f32 to vector<8x1xf32>
    %13 = arith.divf %11, %12 : vector<8x1xf32>
    %14 = vector.broadcast %13 : vector<8x1xf32> to vector<8x32xf32>
    %15 = arith.subf %7, %14 : vector<8x32xf32>
    %16 = arith.mulf %15, %15 : vector<8x32xf32>
    %cst_10 = arith.constant dense<0.000000e+00> : vector<8xf32>
    %17 = vector.multi_reduction <add>, %16, %cst_10 [1] : vector<8x32xf32> to vector<8xf32>
    %18 = vector.shape_cast %17 : vector<8xf32> to vector<8x1xf32>
    %cst_11 = arith.constant 3.200000e+01 : f32
    %19 = vector.broadcast %cst_11 : f32 to vector<8x1xf32>
    %20 = arith.divf %18, %19 : vector<8x1xf32>
    %21 = vector.broadcast %13 : vector<8x1xf32> to vector<8x32xf32>
    %22 = arith.subf %7, %21 : vector<8x32xf32>
    %cst_12 = arith.constant 9.99999974E-6 : f32
    %23 = vector.broadcast %cst_12 : f32 to vector<8x1xf32>
    %24 = arith.addf %20, %23 : vector<8x1xf32>
    %25 = math.rsqrt %24 : vector<8x1xf32>
    %26 = vector.broadcast %25 : vector<8x1xf32> to vector<8x32xf32>
    %27 = arith.mulf %22, %26 : vector<8x32xf32>
    %28 = vector.broadcast %8 : vector<1x32xf32> to vector<8x32xf32>
    %29 = arith.mulf %27, %28 : vector<8x32xf32>
    %30 = vector.broadcast %9 : vector<1x32xf32> to vector<8x32xf32>
    %31 = arith.addf %29, %30 : vector<8x32xf32>
    %cst_13 = arith.constant 0.000000e+00 : f32
    %32 = vector.broadcast %cst_13 : f32 to vector<8x32xf32>
    %33 = arith.maximumf %31, %32 : vector<8x32xf32>
    %c0_14 = arith.constant 0 : index
    %c0_15 = arith.constant 0 : index
    %34 = vector.load %arg7[%c0_14, %c0_15] : memref<32x32xf32, #tpu.memory_space<vmem>>, vector<32x32xf32>
    %cst_16 = arith.constant dense<0.000000e+00> : vector<8x32xf32>
    %35 = tpu.matmul %33, %34, %cst_16 {dimension_numbers = #tpu.dot_dimension_numbers<[1], [0], [0], [1], [0, 0, 1, 1], [], []>} : vector<8x32xf32>, vector<32x32xf32>, vector<8x32xf32> -> vector<8x32xf32>
    %c0_17 = arith.constant 0 : index
    %c0_18 = arith.constant 0 : index
    %36 = vector.load %arg8[%c0_17, %c0_18] : memref<1x32xf32, #tpu.memory_space<vmem>>, vector<1x32xf32>
    %37 = vector.broadcast %36 : vector<1x32xf32> to vector<8x32xf32>
    %38 = arith.addf %35, %37 : vector<8x32xf32>
    %c0_19 = arith.constant 0 : index
    %c0_20 = arith.constant 0 : index
    %39 = vector.load %arg9[%c0_19, %c0_20] : memref<1x32xf32, #tpu.memory_space<vmem>>, vector<1x32xf32>
    %c0_21 = arith.constant 0 : index
    %c0_22 = arith.constant 0 : index
    %40 = vector.load %arg10[%c0_21, %c0_22] : memref<1x32xf32, #tpu.memory_space<vmem>>, vector<1x32xf32>
    %cst_23 = arith.constant dense<0.000000e+00> : vector<8xf32>
    %41 = vector.multi_reduction <add>, %38, %cst_23 [1] : vector<8x32xf32> to vector<8xf32>
    %42 = vector.shape_cast %41 : vector<8xf32> to vector<8x1xf32>
    %cst_24 = arith.constant 3.200000e+01 : f32
    %43 = vector.broadcast %cst_24 : f32 to vector<8x1xf32>
    %44 = arith.divf %42, %43 : vector<8x1xf32>
    %45 = vector.broadcast %44 : vector<8x1xf32> to vector<8x32xf32>
    %46 = arith.subf %38, %45 : vector<8x32xf32>
    %47 = arith.mulf %46, %46 : vector<8x32xf32>
    %cst_25 = arith.constant dense<0.000000e+00> : vector<8xf32>
    %48 = vector.multi_reduction <add>, %47, %cst_25 [1] : vector<8x32xf32> to vector<8xf32>
    %49 = vector.shape_cast %48 : vector<8xf32> to vector<8x1xf32>
    %cst_26 = arith.constant 3.200000e+01 : f32
    %50 = vector.broadcast %cst_26 : f32 to vector<8x1xf32>
    %51 = arith.divf %49, %50 : vector<8x1xf32>
    %52 = vector.broadcast %44 : vector<8x1xf32> to vector<8x32xf32>
    %53 = arith.subf %38, %52 : vector<8x32xf32>
    %cst_27 = arith.constant 9.99999974E-6 : f32
    %54 = vector.broadcast %cst_27 : f32 to vector<8x1xf32>
    %55 = arith.addf %51, %54 : vector<8x1xf32>
    %56 = math.rsqrt %55 : vector<8x1xf32>
    %57 = vector.broadcast %56 : vector<8x1xf32> to vector<8x32xf32>
    %58 = arith.mulf %53, %57 : vector<8x32xf32>
    %59 = vector.broadcast %39 : vector<1x32xf32> to vector<8x32xf32>
    %60 = arith.mulf %58, %59 : vector<8x32xf32>
    %61 = vector.broadcast %40 : vector<1x32xf32> to vector<8x32xf32>
    %62 = arith.addf %60, %61 : vector<8x32xf32>
    %cst_28 = arith.constant 0.000000e+00 : f32
    %63 = vector.broadcast %cst_28 : f32 to vector<8x32xf32>
    %64 = arith.maximumf %62, %63 : vector<8x32xf32>
    %c0_29 = arith.constant 0 : index
    %c0_30 = arith.constant 0 : index
    %65 = vector.load %arg11[%c0_29, %c0_30] : memref<32x432xf32, #tpu.memory_space<vmem>>, vector<32x432xf32>
    %cst_31 = arith.constant dense<0.000000e+00> : vector<8x432xf32>
    %66 = tpu.matmul %64, %65, %cst_31 {dimension_numbers = #tpu.dot_dimension_numbers<[1], [0], [0], [1], [0, 0, 1, 1], [], []>} : vector<8x32xf32>, vector<32x432xf32>, vector<8x432xf32> -> vector<8x432xf32>
    %c0_32 = arith.constant 0 : index
    %c0_33 = arith.constant 0 : index
    %67 = vector.load %arg12[%c0_32, %c0_33] : memref<1x432xf32, #tpu.memory_space<vmem>>, vector<1x432xf32>
    %68 = vector.broadcast %67 : vector<1x432xf32> to vector<8x432xf32>
    %69 = arith.addf %66, %68 : vector<8x432xf32>
    %c0_34 = arith.constant 0 : index
    %c0_35 = arith.constant 0 : index
    %70 = vector.load %arg2[%c0_34, %c0_35] : memref<8x27xf32, #tpu.memory_space<vmem>>, vector<8x27xf32>
    %c0_36 = arith.constant 0 : index
    %c0_37 = arith.constant 0 : index
    %71 = vector.load %arg13[%c0_36, %c0_37] : memref<27x432xf32, #tpu.memory_space<vmem>>, vector<27x432xf32>
    %cst_38 = arith.constant dense<0.000000e+00> : vector<8x432xf32>
    %72 = tpu.matmul %70, %71, %cst_38 {dimension_numbers = #tpu.dot_dimension_numbers<[1], [0], [0], [1], [0, 0, 1, 1], [], []>} : vector<8x27xf32>, vector<27x432xf32>, vector<8x432xf32> -> vector<8x432xf32>
    %73 = vector.extract_strided_slice %69 {offsets = [0, 0], sizes = [8, 144], strides = [1, 1]} : vector<8x432xf32> to vector<8x144xf32>
    %74 = vector.extract_strided_slice %72 {offsets = [0, 0], sizes = [8, 144], strides = [1, 1]} : vector<8x432xf32> to vector<8x144xf32>
    %75 = arith.mulf %73, %74 : vector<8x144xf32>
    %76 = vector.extract_strided_slice %69 {offsets = [0, 144], sizes = [8, 144], strides = [1, 1]} : vector<8x432xf32> to vector<8x144xf32>
    %77 = vector.extract_strided_slice %72 {offsets = [0, 144], sizes = [8, 144], strides = [1, 1]} : vector<8x432xf32> to vector<8x144xf32>
    %78 = arith.mulf %76, %77 : vector<8x144xf32>
    %79 = arith.addf %75, %78 : vector<8x144xf32>
    %80 = vector.extract_strided_slice %69 {offsets = [0, 288], sizes = [8, 144], strides = [1, 1]} : vector<8x432xf32> to vector<8x144xf32>
    %81 = vector.extract_strided_slice %72 {offsets = [0, 288], sizes = [8, 144], strides = [1, 1]} : vector<8x432xf32> to vector<8x144xf32>
    %82 = arith.mulf %80, %81 : vector<8x144xf32>
    %83 = arith.addf %79, %82 : vector<8x144xf32>
    %c0_39 = arith.constant 0 : index
    %c0_40 = arith.constant 0 : index
    %84 = vector.load %arg14[%c0_39, %c0_40] : memref<8x144xf32, #tpu.memory_space<vmem>>, vector<8x144xf32>
    tpu.vector_store %arg14[%c0_39, %c0_40], %83 {strides = array<i32>} : memref<8x144xf32, #tpu.memory_space<vmem>>, vector<8x144xf32>,
    return
  }
  func.func @transform_0(%arg0: i32) -> (i32, i32) {
    %c0_i32 = arith.constant 0 : i32
    %c0_i32_0 = arith.constant 0 : i32
    return %arg0, %c0_i32 : i32, i32
  }
  func.func @transform_1(%arg0: i32) -> (i32, i32) {
    %c0_i32 = arith.constant 0 : i32
    %c0_i32_0 = arith.constant 0 : i32
    return %arg0, %c0_i32 : i32, i32
  }
  func.func @transform_2(%arg0: i32) -> (i32, i32) {
    %c0_i32 = arith.constant 0 : i32
    %c0_i32_0 = arith.constant 0 : i32
    %c0_i32_1 = arith.constant 0 : i32
    return %c0_i32, %c0_i32_0 : i32, i32
  }
  func.func @transform_3(%arg0: i32) -> (i32, i32) {
    %c0_i32 = arith.constant 0 : i32
    %c0_i32_0 = arith.constant 0 : i32
    %c0_i32_1 = arith.constant 0 : i32
    return %c0_i32, %c0_i32_0 : i32, i32
  }
  func.func @transform_4(%arg0: i32) -> (i32, i32) {
    %c0_i32 = arith.constant 0 : i32
    %c0_i32_0 = arith.constant 0 : i32
    %c0_i32_1 = arith.constant 0 : i32
    return %c0_i32, %c0_i32_0 : i32, i32
  }
  func.func @transform_5(%arg0: i32) -> (i32, i32) {
    %c0_i32 = arith.constant 0 : i32
    %c0_i32_0 = arith.constant 0 : i32
    %c0_i32_1 = arith.constant 0 : i32
    return %c0_i32, %c0_i32_0 : i32, i32
  }
  func.func @transform_6(%arg0: i32) -> (i32, i32) {
    %c0_i32 = arith.constant 0 : i32
    %c0_i32_0 = arith.constant 0 : i32
    %c0_i32_1 = arith.constant 0 : i32
    return %c0_i32, %c0_i32_0 : i32, i32
  }
  func.func @transform_7(%arg0: i32) -> (i32, i32) {
    %c0_i32 = arith.constant 0 : i32
    %c0_i32_0 = arith.constant 0 : i32
    %c0_i32_1 = arith.constant 0 : i32
    return %c0_i32, %c0_i32_0 : i32, i32
  }
  func.func @transform_8(%arg0: i32) -> (i32, i32) {
    %c0_i32 = arith.constant 0 : i32
    %c0_i32_0 = arith.constant 0 : i32
    %c0_i32_1 = arith.constant 0 : i32
    return %c0_i32, %c0_i32_0 : i32, i32
  }
  func.func @transform_9(%arg0: i32) -> (i32, i32) {
    %c0_i32 = arith.constant 0 : i32
    %c0_i32_0 = arith.constant 0 : i32
    %c0_i32_1 = arith.constant 0 : i32
    return %c0_i32, %c0_i32_0 : i32, i32
  }
  func.func @transform_10(%arg0: i32) -> (i32, i32) {
    %c0_i32 = arith.constant 0 : i32
    %c0_i32_0 = arith.constant 0 : i32
    %c0_i32_1 = arith.constant 0 : i32
    return %c0_i32, %c0_i32_0 : i32, i32
  }
  func.func @transform_11(%arg0: i32) -> (i32, i32) {
    %c0_i32 = arith.constant 0 : i32
    %c0_i32_0 = arith.constant 0 : i32
    %c0_i32_1 = arith.constant 0 : i32
    return %c0_i32, %c0_i32_0 : i32, i32
  }
  func.func @transform_12(%arg0: i32) -> (i32, i32) {
    %c0_i32 = arith.constant 0 : i32
    %c0_i32_0 = arith.constant 0 : i32
    %c0_i32_1 = arith.constant 0 : i32
    return %c0_i32, %c0_i32_0 : i32, i32
  }
  func.func @transform_13(%arg0: i32) -> (i32, i32) {
    %c0_i32 = arith.constant 0 : i32
    %c0_i32_0 = arith.constant 0 : i32
    return %arg0, %c0_i32 : i32, i32
  }
}

</mosaic_0001>

<bundles_post_ra>
// kernel: tpu_custom_call.1
= control target key start
LH: loop header
LB: loop body
LE: loop exit
PB: predicated region body
PF: predicated region fallthrough
CT: control target
= control target key end

     0   :  { %18 = vsyncpa [#allocation3], 0  ;;  %s977_s0 = inlined_call_operand.vmem [shape: f32[8,1], index: 0, kind: input, shape index: {}]   ;;  %s978_s1 = inlined_call_operand.vmem [shape: f32[8,27], index: 1, kind: input, shape index: {}]   ;;  %s979_s2 = inlined_call_operand.hbm [shape: f32[1,32], index: 2, kind: input, shape index: {}]   ;;  %s980_s3 = inlined_call_operand.vmem [shape: f32[1,32], index: 3, kind: input, shape index: {}]   ;;  %s981_s4 = inlined_call_operand.vmem [shape: f32[1,32], index: 4, kind: input, shape index: {}]   ;;  %s982_s5 = inlined_call_operand.vmem [shape: f32[1,32], index: 5, kind: input, shape index: {}]   ;;  %s983_s6 = inlined_call_operand.hbm [shape: f32[32,32], index: 6, kind: input, shape index: {}]   ;;  %s984_s7 = inlined_call_operand.vmem [shape: f32[1,32], index: 7, kind: input, shape index: {}]   ;;  %s985_s8 = inlined_call_operand.vmem [shape: f32[1,32], index: 8, kind: input, shape index: {}]   ;;  %s986_s9 = inlined_call_operand.vmem [shape: f32[1,32], index: 9, kind: input, shape index: {}]   ;;  %s987_s10 = inlined_call_operand.hbm [shape: f32[32,432], index: 10, kind: input, shape index: {}]   ;;  %s988_s11 = inlined_call_operand.vmem [shape: f32[1,432], index: 11, kind: input, shape index: {}]   ;;  %s989_s12 = inlined_call_operand.hbm [shape: f32[27,432], index: 12, kind: input, shape index: {}]   ;;  %s990_s13 = inlined_call_operand.hbm [shape: f32[8,144], index: 13, kind: output, shape index: {}]  }
   0x1   :  { %19 = vsyncpa [#allocation6], 0 }
   0x2   :  { %20 = vsyncpa [#allocation9], 0 }
   0x3   :  { %21 = vsyncpa [#allocation4], 0  ;;  %s831_s25 = smov [#allocation5]  }
   0x4   :  { %s47_s26 = sshll.u32 %s831_s25, 4  ;;  %s48_s26 = int_to_ptr.vmem [resolvable:$true] %s47_s26 }
   0x5   :  { %s731_s27 = scalar_lea.vmem %s48_s26, 512  ;;  %p736_p1 = scmp.lt.s32.totalorder %s48_s26, %s48_s26 }
   0x6   :  { %p732_p0 = scmp.ne.s32.totalorder %s48_s26, %s731_s27  ;;  %p737_p2 = scmp.lt.s32.totalorder %s731_s27, %s731_s27 }
   0x8   :  { %p738_p3 = por %p737_p2, %p736_p1 }
   0xa   :  { %p739_p4 = pnand %p738_p3, %p732_p0 }
   0xc   :  { %742 = shalt.err (!%p739_p4)
}
   0xd   :  { %s832_s28 = smov 128   ;;  %s833_s29 = smov 8  }
   0xe   :  { %53 = dma.hbm_to_vmem [thread:$0]  %s983_s6, 512, %s48_s26, [#allocation6], %s832_s28, %s832_s28, %s833_s29  }
   0xf   :  { %s834_s15 = smov [#allocation2]   ;;  %s835_s17 = smov [#allocation7]  }
  0x10   :  { %s32_s16 = sshll.u32 %s834_s15, 4  ;;  %s65_s18 = sshll.u32 %s835_s17, 4  ;;  %s33_s16 = int_to_ptr.vmem [resolvable:$true] %s32_s16  ;;  %s66_s18 = int_to_ptr.vmem [resolvable:$true] %s65_s18 }
  0x11   :  { %s751_s19 = scalar_lea.vmem %s33_s16, 16  ;;  %s755_s20 = scalar_lea.vmem %s33_s16, 32 }
  0x12   :  { %p752_p5 = scmp.ne.s32.totalorder %s33_s16, %s751_s19  ;;  %p756_p6 = scmp.lt.s32.totalorder %s33_s16, %s33_s16 }
  0x13   :  { %p757_p7 = scmp.lt.s32.totalorder %s755_s20, %s751_s19 }
  0x15   :  { %p758_p8 = por %p757_p7, %p756_p6 }
  0x17   :  { %p759_p9 = pnand %p758_p8, %p752_p5 }
  0x19   :  { %762 = shalt.err (!%p759_p9)
}
  0x1a   :  { %35 = dma.hbm_to_vmem [thread:$0]  %s979_s2, 16, %s33_s16, [#allocation3]  }
  0x1b   :  { %s771_s23 = scalar_lea.vmem %s66_s18, 2048  ;;  %p776_p11 = scmp.lt.s32.totalorder %s66_s18, %s66_s18 }
  0x1c   :  { %p772_p10 = scmp.ne.s32.totalorder %s66_s18, %s771_s23  ;;  %p777_p12 = scmp.lt.s32.totalorder %s771_s23, %s771_s23 }
  0x1e   :  { %p778_p13 = por %p777_p12, %p776_p11 }
  0x20   :  { %p779_p0 = pnand %p778_p13, %p772_p10 }
  0x22   :  { %782 = shalt.err (!%p779_p0)
}
  0x23   :  { %s836_s6 = smov 512   ;;  %s837_s24 = smov 32  }
  0x24   :  { %71 = dma.hbm_to_vmem [thread:$0]  %s987_s10, 2048, %s66_s18, [#allocation6], %s836_s6, %s836_s6, %s837_s24  }
  0x25   :  { %s838_s27 = smov [#allocation8]  }
  0x26   :  { %s79_s28 = sshll.u32 %s838_s27, 4  ;;  %s80_s28 = int_to_ptr.vmem [resolvable:$true] %s79_s28 }
  0x27   :  { %s791_s29 = scalar_lea.vmem %s80_s28, 2048  ;;  %p796_p2 = scmp.lt.s32.totalorder %s80_s28, %s80_s28 }
  0x28   :  { %p792_p1 = scmp.ne.s32.totalorder %s80_s28, %s791_s29  ;;  %p797_p3 = scmp.lt.s32.totalorder %s791_s29, %s791_s29 }
  0x2a   :  { %p798_p4 = por %p797_p3, %p796_p2 }
  0x2c   :  { %p799_p5 = pnand %p798_p4, %p792_p1 }
  0x2e   :  { %802 = shalt.err (!%p799_p5)
}
  0x2f   :  { %85 = dma.hbm_to_vmem [thread:$0]  %s989_s12, 2048, %s80_s28, [#allocation9], %s836_s6, %s836_s6, %s837_s24  }
  0x30   :  { %823 = dma.done.wait [#allocation3], 16  }
  0x31   :  { %824 = vsyncadd [#allocation3], 4294967280 }
  0x32   :  { %825 = dma.done.wait [#allocation6], 2560  }
  0x33   :  { %826 = vsyncadd [#allocation6], 4294964736 }
  0x34   :  { %827 = dma.done.wait [#allocation9], 2048  }
  0x35   :  { %828 = vsyncadd [#allocation9], 4294965248  ;;  %v839_v0 = vmov 0   ;;  %v98_v1 = vld [vmem:[%s977_s0] sm:$0xff]  ;;  %vm122_vm0 = vcmask 261120   ;;  %v840_v14 = vmov 0.0  }
  0x36   :  { %718 = vset.pattern.permute.xlu0 %v839_v0  ;;  %v672_v2 = vld [vmem:[#allocation2] ss:$0 sm:$0xff]  ;;  %693 = vmatprep.subr.mxu0 %v840_v14  ;;  %v154_v15 = vld [vmem:[#allocation5 + $0x10] sm:$0xff]  ;;  %vm841_vm1 = vmmov 0   ;;  %v153_v16 = vld [vmem:[#allocation5 + $0x8] sm:$0xff]  ;;  %vm470_vm2 = vcmask 1042432  }
  0x37   :  { %102 = vperm.xlu0 %718, %v98_v1   ;;  %v673_v4 = vld [vmem:[%s980_s3] ss:$0 sm:$0xff]  ;;  %701 = vmatprep.mubr.msk.f32.mxu0 %vm841_vm1, %v840_v14  ;;  %v152_v17 = vld [vmem:[#allocation5] sm:$0xff]  ;;  %v279_v38 = vld [vmem:[#allocation7 + $0x68] sm:$0xff]  ;;  %vm466_vm3 = vcmask 220160   ;;  %vm634_vm4 = vcmask 916480  }
  0x38   :  { %v155_v13 = vld [vmem:[#allocation5 + $0x18] sm:$0xff]  ;;  %371 = vmatprep.mubr.f32.mxu1 %v840_v14  ;;  %v278_v40 = vld [vmem:[#allocation7 + $0x60] sm:$0xff]  ;;  %331 = vmatprep.subr.mxu1 %v279_v38  ;;  %v280_v41 = vld [vmem:[#allocation7 + $0x70] sm:$0xff]  ;;  %vm653_vm5 = vcmask 130048   ;;  %vm646_vm6 = vcmask 785408   ;;  %s844_s23 = smov [#allocation10]  }
  0x39   :  { %694 = vmatpush3.msra.mxu0 %v155_v13  ;;  %v674_v22 = vld [vmem:[%s981_s4] ss:$0 sm:$0xff]  ;;  %v275_v42 = vld [vmem:[#allocation7 + $0x48] sm:$0xff]  ;;  %332 = vmatpush1.msra.mxu1 %v278_v40  ;;  %v274_v44 = vld [vmem:[#allocation7 + $0x40] sm:$0xff]  ;;  %s661_s6 = sshll.u32 %s844_s23, 4  ;;  %s662_s6 = int_to_ptr.vmem [resolvable:$true] %s661_s6 }
  0x3a   :  { %695 = vmatprep.subr.mxu0 %v840_v14  ;;  %v675_v24 = vld [vmem:[%s982_s5] ss:$0 sm:$0xff]  ;;  %v276_v45 = vld [vmem:[#allocation7 + $0x50] sm:$0xff]  ;;  %v271_v46 = vld [vmem:[#allocation7 + $0x28] sm:$0xff]  ;;  %333 = vmatprep.subr.mxu1 %v275_v42  ;;  %s803_s24 = scalar_lea.vmem %s662_s6, 256  ;;  %p808_p7 = scmp.lt.s32.totalorder %s662_s6, %s662_s6 }
  0x3b   :  { %696 = vmatpush3.msra.mxu0 %v154_v15  ;;  %v676_v28 = vld [vmem:[%s984_s7] ss:$0 sm:$0xff]  ;;  %v270_v48 = vld [vmem:[#allocation7 + $0x20] sm:$0xff]  ;;  %v272_v49 = vld [vmem:[#allocation7 + $0x30] sm:$0xff]  ;;  %334 = vmatpush1.msra.mxu1 %v274_v44  ;;  %p804_p6 = scmp.ne.s32.totalorder %s662_s6, %s803_s24  ;;  %p809_p8 = scmp.lt.s32.totalorder %s803_s24, %s803_s24 }
  0x3c   :  { %697 = vmatprep.subr.mxu0 %v840_v14  ;;  %v281_v39 = vld [vmem:[#allocation7 + $0x78] sm:$0xff]  ;;  %v267_v50 = vld [vmem:[#allocation7 + $0x8] sm:$0xff]  ;;  %335 = vmatprep.subr.mxu1 %v271_v46  ;;  %v266_v52 = vld [vmem:[#allocation7] sm:$0xff] }
  0x3d   :  { %698 = vmatpush3.msra.mxu0 %v153_v16  ;;  %v277_v43 = vld [vmem:[#allocation7 + $0x58] sm:$0xff]  ;;  %v268_v53 = vld [vmem:[#allocation7 + $0x10] sm:$0xff]  ;;  %336 = vmatpush1.msra.mxu1 %v270_v48  ;;  %v463_v54 = vld [vmem:[#allocation8 + $0x68] sm:$0x7]  ;;  %p810_p9 = por %p809_p8, %p808_p7 }
  0x3e   :  { %699 = vmatprep.subr.mxu0 %v840_v14  ;;  %v273_v47 = vld [vmem:[#allocation7 + $0x38] sm:$0xff]  ;;  %337 = vmatprep.subr.mxu1 %v267_v50  ;;  %v450_v15 = vld [vmem:[#allocation8] sm:$0xff]  ;;  %v452_v16 = vld [vmem:[#allocation8 + $0x10] sm:$0xff] }
  0x3f   :  { %700 = vmatpush3.msra.mxu0 %v152_v17  ;;  %v269_v51 = vld [vmem:[#allocation7 + $0x18] sm:$0xff]  ;;  %338 = vmatpush1.msra.mxu1 %v266_v52  ;;  %p811_p10 = pnand %p810_p9, %p804_p6 }
  0x40   :  { %402 = vmatprep.subr.mxu0 %v281_v39  ;;  %v465_v55 = vld [vmem:[#allocation8 + $0x78] sm:$0x7]  ;;  %682 = vmatprep.subr.msk.mxu1 %vm470_vm2, %v463_v54  ;;  %v678_v60 = vld [vmem:[%s985_s8] ss:$0 sm:$0xff] }
  0x41   :  { %v679_v62 = vld [vmem:[%s986_s9] ss:$0 sm:$0xff] }
  0x42   :  { %v453_v13 = vld [vmem:[#allocation8 + $0x18] sm:$0xff] }
  0x43   :  { %v449_v17 = vld [vmem:[%s978_s1] sm:$0xff]  ;;  %s842_s1 = smov 112  }
  0xb2   :  { %v103_v3 = vpop.permute.xlu0 %102 }
  0xb3   :  { %v111_v5 = vmul.f32 %v672_v2, %v103_v3  ;;  %v462_v2 = vld [vmem:[#allocation8 + $0x60] sm:$0x7]  ;;  %v464_v3 = vld [vmem:[#allocation8 + $0x70] sm:$0x7] }
  0xb5   :  { %v119_v6 = vadd.f32 %v673_v4, %v111_v5  ;;  %v459_v4 = vld [vmem:[#allocation8 + $0x48] sm:$0xff]  ;;  %v461_v5 = vld [vmem:[#allocation8 + $0x58] sm:$0xff] }
  0xb7   :  { %v123_v7 = vsel %vm122_vm0, %v119_v6, 0.0 }
  0xb8   :  { %124 = vadd.xlane.f32.xlu0 %v123_v7  ;;  %v460_v7 = vld [vmem:[#allocation8 + $0x50] sm:$0xff] }
 0x141   :  { %v125_v8 = vpop.xlane.xlu0 %124 }
 0x142   :  { %v127_v9 = vmul.f32 0.03125, %v125_v8  ;;  %v455_v8 = vld [vmem:[#allocation8 + $0x28] sm:$0xff] }
 0x144   :  { %v128_v10 = vsub.f32 %v119_v6, %v127_v9  ;;  %v458_v6 = vld [vmem:[#allocation8 + $0x40] sm:$0xff]  ;;  %v457_v9 = vld [vmem:[#allocation8 + $0x38] sm:$0xff] }
 0x146   :  { %v129_v11 = vmul.f32 %v128_v10, %v128_v10 }
 0x148   :  { %v130_v12 = vsel %vm122_vm0, %v129_v11, 0.0  ;;  %v456_v11 = vld [vmem:[#allocation8 + $0x30] sm:$0xff] }
 0x149   :  { %131 = vadd.xlane.f32.xlu1 %v130_v12  ;;  %v451_v12 = vld [vmem:[#allocation8 + $0x8] sm:$0xff] }
 0x1d2   :  { %v132_v18 = vpop.xlane.xlu1 %131 }
 0x1d3   :  { %v133_v19 = vmul.f32 0.03125, %v132_v18  ;;  %v284_v18 = vlaneseq }
 0x1d5   :  { %v134_v20 = vadd.f32 1e-05, %v133_v19  ;;  %v285_v19 = vshrl.u32 %v284_v18, 7 }
 0x1d7   :  { %719 = vrsqrt.f32 %v134_v20  ;;  %v286_v20 = vsub.s32 0, %v285_v19 }
 0x1e4   :  { %v720_v21 = vpop.eup %719 }
 0x1e5   :  { %v136_v23 = vmul.f32 %v720_v21, %v128_v10  ;;  %v454_v10 = vld [vmem:[#allocation8 + $0x20] sm:$0xff]  ;;  %v294_v21 = vsub.s32 2, %v285_v19 }
 0x1e7   :  { %v143_v25 = vmul.f32 %v674_v22, %v136_v23  ;;  %v282_v22 = vld [vmem:[%s988_s11] sm:$0xf]  ;;  %v298_v23 = vsub.s32 3, %v285_v19  ;;  %s843_s11 = smov 96  }
 0x1e9   :  { %v150_v26 = vadd.f32 %v675_v24, %v143_v25 }
 0x1eb   :  { %v151_v27 = vmax.f32 %v150_v26, 0.0  ;;  %v287_v26 = vrot.slane %v282_v22, %v286_v20 }
 0x1ed   :  { %702 = vmatmul.mubr.msk.f32.vlgmr.msra.gmra.mxu0 %vm122_vm0, %v151_v27  ;;  %v295_v27 = vrot.slane %v282_v22, %v294_v21 }
 0x1ee   :  { %442 = vmatprep.mubr.f32.mxu0 %v840_v14  ;;  %403 = vmatpush1.msra.mxu0 %v280_v41 }
 0x1ef   :  { %404 = vmatprep.subr.mxu0 %v277_v43 }
 0x1f0   :  { %405 = vmatpush1.msra.mxu0 %v276_v45 }
 0x1f1   :  { %406 = vmatprep.subr.mxu0 %v273_v47 }
 0x1f2   :  { %407 = vmatpush1.msra.mxu0 %v272_v49 }
 0x1f3   :  { %408 = vmatprep.subr.mxu0 %v269_v51 }
 0x1f4   :  { %409 = vmatpush1.msra.mxu0 %v268_v53 }
 0x1f5   :  { %685 = vmatprep.subr.msk.mxu0 %vm470_vm2, %v465_v55 }
 0x2ad   :  { %v232_v29 = vpop.f32.mrf.mxu0 }
 0x2ae   :  { %v233_v30 = vadd.f32 %v676_v28, %v232_v29  ;;  %v290_v28 = vsub.s32 1, %v285_v19  ;;  %v299_v29 = vrot.slane %v282_v22, %v298_v23 }
 0x2af   :  { %v703_v31 = vpop.f32.mrf.mxu0 }
 0x2b0   :  { %v238_v32 = vsel %vm122_vm0, %v233_v30, 0.0 }
 0x2b1   :  { %239 = vadd.xlane.f32.xlu1 %v238_v32 }
 0x33a   :  { %v240_v33 = vpop.xlane.xlu1 %239 }
 0x33b   :  { %v241_v34 = vmul.f32 0.03125, %v240_v33  ;;  %v291_v33 = vrot.slane %v282_v22, %v290_v28 }
 0x33d   :  { %v242_v35 = vsub.f32 %v233_v30, %v241_v34 }
 0x33f   :  { %v243_v36 = vmul.f32 %v242_v35, %v242_v35 }
 0x341   :  { %v244_v37 = vsel %vm122_vm0, %v243_v36, 0.0 }
 0x342   :  { %245 = vadd.xlane.f32.xlu1 %v244_v37 }
 0x3cb   :  { %v246_v56 = vpop.xlane.xlu1 %245 }
 0x3cc   :  { %v247_v57 = vmul.f32 0.03125, %v246_v56 }
 0x3ce   :  { %v248_v58 = vadd.f32 1e-05, %v247_v57 }
 0x3d0   :  { %721 = vrsqrt.f32 %v248_v58 }
 0x3dd   :  { %v722_v59 = vpop.eup %721 }
 0x3de   :  { %v250_v61 = vmul.f32 %v722_v59, %v242_v35 }
 0x3e0   :  { %v257_v63 = vmul.f32 %v678_v60, %v250_v61 }
 0x3e2   :  { %v264_v0 = vadd.f32 %v679_v62, %v257_v63 }
 0x3e4   :  { %v265_v1 = vmax.f32 %v264_v0, 0.0 }
 0x3e6   :  { %680 = vmatmul.mubr.msk.f32.vlgmr.msra.gmra.mxu1 %vm122_vm0, %v265_v1  ;;  %681 = vmatmul.mubr.msk.f32.vlgmr.msra.gmra.mxu0 %vm122_vm0, %v265_v1 }
 0x3e7   :  { %683 = vmatpush1.msk.msra.mxu1 %vm470_vm2, %v462_v2  ;;  %686 = vmatpush1.msk.msra.mxu0 %vm470_vm2, %v464_v3 }
 0x3e8   :  { %509 = vmatprep.subr.mxu1 %v459_v4  ;;  %580 = vmatprep.subr.mxu0 %v461_v5 }
 0x3e9   :  { %510 = vmatpush1.msra.mxu1 %v458_v6  ;;  %581 = vmatpush1.msra.mxu0 %v460_v7 }
 0x3ea   :  { %511 = vmatprep.subr.mxu1 %v455_v8  ;;  %582 = vmatprep.subr.mxu0 %v457_v9 }
 0x3eb   :  { %512 = vmatpush1.msra.mxu1 %v454_v10  ;;  %583 = vmatpush1.msra.mxu0 %v456_v11 }
 0x3ec   :  { %513 = vmatprep.subr.mxu1 %v451_v12  ;;  %584 = vmatprep.subr.mxu0 %v453_v13 }
 0x3ed   :  { %514 = vmatpush1.msra.mxu1 %v450_v15  ;;  %547 = vmatprep.mubr.f32.mxu1 %v840_v14 }
 0x3ee   :  { %585 = vmatpush1.msra.mxu0 %v452_v16  ;;  %618 = vmatprep.mubr.f32.mxu0 %v840_v14 }
 0x3ef   :  { %684 = vmatmul.mubr.msk.f32.vlgmr.msra.gmra.mxu1 %vm466_vm3, %v449_v17  ;;  %687 = vmatmul.mubr.msk.f32.vlgmr.msra.gmra.mxu0 %vm466_vm3, %v449_v17 }
 0x4a6   :  { %v373_v24 = vpop.f32.mrf.mxu1  ;;  %v444_v25 = vpop.f32.mrf.mxu0 }
 0x4a7   :  { %v374_v14 = vadd.f32 %v373_v24, %v287_v26  ;;  %v445_v32 = vadd.f32 %v444_v25, %v295_v27 }
 0x4a8   :  { %v375_v30 = vpop.f32.mrf.mxu1  ;;  %v446_v31 = vpop.f32.mrf.mxu0 }
 0x4a9   :  { %v447_v36 = vadd.f32 %v446_v31, %v299_v29  ;;  %v376_v41 = vadd.f32 %v375_v30, %v291_v33 }
 0x4af   :  { %v549_v34 = vpop.f32.mrf.mxu1  ;;  %v620_v35 = vpop.f32.mrf.mxu0 }
 0x4b0   :  { %v625_v37 = vmul.f32 %v549_v34, %v374_v14  ;;  %v627_v38 = vmul.f32 %v620_v35, %v445_v32 }
 0x4b1   :  { %v551_v39 = vpop.f32.mrf.mxu1  ;;  %v622_v40 = vpop.f32.mrf.mxu0 }
 0x4b2   :  { %v640_v42 = vmul.f32 %v622_v40, %v447_v36  ;;  %632 = vrot.lane.b32.xlu1 %v627_v38, %s842_s1  ;;  %v626_v43 = vmul.f32 %v551_v39, %v376_v41 }
 0x4b4   :  { %644 = vrot.lane.b32.xlu0 %v640_v42, %s843_s11 }
 0x4b6   :  { %630 = vrot.lane.b32.xlu1 %v626_v43, %s842_s1 }
 0x4ba   :  { %642 = vrot.lane.b32.xlu1 %v627_v38, %s843_s11 }
 0x524   :  { %v633_v44 = vpop.permute.xlu1 %632 }
 0x525   :  { %v639_v45 = vadd.f32 %v633_v44, %v626_v43 }
 0x526   :  { %v645_v46 = vpop.permute.xlu0 %644 }
 0x527   :  { %v651_v47 = vadd.f32 %v645_v46, %v639_v45 }
 0x528   :  { %v631_v48 = vpop.permute.xlu1 %630 }
 0x529   :  { %v635_v49 = vsel %vm634_vm4, %v631_v48, %v633_v44  ;;  %654 = vst.msk [vmem:[#allocation10 + $0x8] sm:$0xff] %vm653_vm5, %v651_v47 }
 0x52a   :  { %v638_v50 = vadd.f32 %v635_v49, %v625_v37 }
 0x52c   :  { %v643_v51 = vpop.permute.xlu1 %642 }
 0x52d   :  { %v647_v52 = vsel %vm646_vm6, %v643_v51, %v645_v46 }
 0x52e   :  { %v650_v53 = vadd.f32 %v647_v52, %v638_v50 }
 0x530   :  { %652 = vst [vmem:[#allocation10] sm:$0xff] %v650_v53 }
 0x531   :  { %814 = shalt.err (!%p811_p10)
}
 0x532   :  { %664 = dma.vmem_to_hbm [thread:$0]  %s662_s6, 256, %s990_s13, [#allocation4]  }
 0x533   :  { %829 = dma.done.wait [#allocation4], 256  }
 0x534   :  { %830 = vsyncadd [#allocation4], 4294967040 }
 0x535   :  { %668 = vsyncpa [#allocation3], 1 }
 0x536   :  { %669 = vsyncpa [#allocation6], 1 }
 0x537   :  { %670 = vsyncpa [#allocation9], 1 }
 0x538   :  { %671 = vsyncpa [#allocation4], 1 }

</bundles_post_ra>
